<compile_context>
chip_gen: v7x
topology: tpu7x:2x2x1
jax: 0.10.0
libtpu: 0.0.40
codegen_flags: <defaults>
</compile_context>

<pallas_src>
import functools

import jax
import jax.numpy as jnp
import numpy as np
from jax import lax
from jax.experimental import pallas as pl
from jax.experimental.pallas import tpu as pltpu


def _dec_block_kernel(x_ref, skip_ref, mup_ref, w1_ref, w2_ref, o_ref,
                      ubuf, zbuf, *, H, W, Cin, Cskip, Cout1, Cout2):
    """Fused DecBlock for one batch element.

    x_ref:    (1, Cin,  H*W)       f32   input, flattened spatial on lanes
    skip_ref: (1, Cskip, 2H*2W)    f32   skip connection
    mup_ref:  (H*W, 2H*2W)         bf16  constant 0/1 nearest-2x expansion matrix
    w1_ref:   (Cout1, 4*Cin+1)     bf16  conv1 weights (+ bias column)
    w2_ref:   (Cout2, 9*Ccat+1)    bf16  conv2 weights (+ bias column)
    o_ref:    (1, Cout2, 2H*2W)    f32   output
    ubuf:     (Cin,  S2+W2+1)      f32   scratch: upsampled x + right/bottom pad margin
    zbuf:     (Ccat, S2+2*(W2+1))  f32   scratch: concat([y1, skip]) + SAME-pad margins
    """
    H2, W2 = 2 * H, 2 * W
    S2 = H2 * W2
    Ccat = Cout1 + Cskip
    f32 = jnp.float32
    bf16 = jnp.bfloat16

    # Column index of each flattened spatial position (lane axis).
    col = lax.broadcasted_iota(jnp.int32, (1, S2), 1) % W2
    not_first_col = col > 0            # valid when the tap reads column j-1
    not_last_col = col < (W2 - 1)      # valid when the tap reads column j+1

    ones_row = jnp.ones((1, S2), f32)  # folds bias into the conv matmuls

    # ---------------- conv1: upsample + ZeroPad2d((0,1,0,1)) + 2x2 conv + ReLU
    xb = x_ref[0].astype(bf16)                                     # (Cin, H*W)
    u = jnp.dot(xb, mup_ref[...], preferred_element_type=f32)      # (Cin, S2) nearest-2x
    ubuf[...] = jnp.zeros_like(ubuf)                               # zero pad margin
    ubuf[:, 0:S2] = u

    taps1 = []
    for di in (0, 1):
        for dj in (0, 1):
            start = di * W2 + dj
            t = ubuf[:, start:start + S2]                          # (Cin, S2)
            if dj == 1:                                            # right zero-pad column
                t = jnp.where(not_last_col, t, 0.0)
            taps1.append(t)
    im1 = jnp.concatenate(taps1 + [ones_row], axis=0)              # (4*Cin+1, S2)
    y1 = jnp.dot(w1_ref[...], im1.astype(bf16),
                 preferred_element_type=f32)                       # (Cout1, S2)
    y1 = jnp.maximum(y1, 0.0)                                      # ReLU

    # ---------------- concat([y1, skip]) into a zero-margined flat buffer.
    off = W2 + 1
    zbuf[...] = jnp.zeros_like(zbuf)
    zbuf[0:Cout1, off:off + S2] = y1
    zbuf[Cout1:Ccat, off:off + S2] = skip_ref[0]

    # ---------------- conv2: 3x3, SAME padding, ReLU -- one (Cout2, 9*Ccat+1) matmul
    taps2 = []
    for oi in (-1, 0, 1):
        for oj in (-1, 0, 1):
            start = off + oi * W2 + oj
            t = zbuf[:, start:start + S2]                          # (Ccat, S2)
            if oj == -1:
                t = jnp.where(not_first_col, t, 0.0)
            elif oj == 1:
                t = jnp.where(not_last_col, t, 0.0)
            taps2.append(t)
    im2 = jnp.concatenate(taps2 + [ones_row], axis=0)              # (9*Ccat+1, S2)
    y2 = jnp.dot(w2_ref[...], im2.astype(bf16),
                 preferred_element_type=f32)                       # (Cout2, S2)
    y2 = jnp.maximum(y2, 0.0)                                      # ReLU

    o_ref[...] = y2.reshape(1, Cout2, S2).astype(o_ref.dtype)      # lane-dense store


def dec_block_forward(x_nchw, skip_nchw, w1, b1, w2, b2):
    """DecBlock forward. Inputs/outputs NCHW, weights HWIO (like the f32 ref)."""
    B, Cin, H, W = x_nchw.shape
    _, Cskip, H2, W2 = skip_nchw.shape
    kh1, kw1, _, Cout1 = w1.shape            # (2, 2, Cin, Cout1)
    kh2, kw2, Ccat, Cout2 = w2.shape         # (3, 3, Cout1+Cskip, Cout2)
    S1, S2 = H * W, H2 * W2

    # Flatten spatial onto the lane axis; channels stay leading (NCHW-native).
    x_flat = x_nchw.reshape(B, Cin, S1)
    skip_flat = skip_nchw.reshape(B, Cskip, S2)

    # Constant 0/1 expansion matrix implementing nearest-neighbour 2x upsample:
    # U[c, i*W2+j] = x[c, (i//2)*W + (j//2)]
    mup_np = np.zeros((S1, S2), np.float32)
    ii = np.arange(H2)
    jj = np.arange(W2)
    src = (ii[:, None] // 2) * W + (jj[None, :] // 2)        # (H2, W2) source index
    mup_np[src.reshape(-1), np.arange(S2)] = 1.0
    mup = jnp.asarray(mup_np, dtype=jnp.bfloat16)

    # Weights as single (Cout, K) matrices; bias folded in as an extra column
    # matched by the ones-row appended to the im2col inside the kernel.
    w1m = jnp.transpose(w1, (3, 0, 1, 2)).reshape(Cout1, kh1 * kw1 * Cin)
    w1aug = jnp.concatenate([w1m, b1[:, None]], axis=1).astype(jnp.bfloat16)
    w2m = jnp.transpose(w2, (3, 0, 1, 2)).reshape(Cout2, kh2 * kw2 * Ccat)
    w2aug = jnp.concatenate([w2m, b2[:, None]], axis=1).astype(jnp.bfloat16)

    kernel = functools.partial(_dec_block_kernel, H=H, W=W, Cin=Cin,
                               Cskip=Cskip, Cout1=Cout1, Cout2=Cout2)

    flops = 2 * B * S2 * (Cin * S1                      # upsample expansion matmul
                          + (kh1 * kw1 * Cin + 1) * Cout1
                          + (kh2 * kw2 * Ccat + 1) * Cout2)
    bytes_accessed = (B * Cin * S1 * 4 + B * Cskip * S2 * 4 + S1 * S2 * 2
                      + w1aug.size * 2 + w2aug.size * 2 + B * Cout2 * S2 * 4)

    out = pl.pallas_call(
        kernel,
        out_shape=jax.ShapeDtypeStruct((B, Cout2, S2), x_nchw.dtype),
        grid=(B,),
        in_specs=[
            pl.BlockSpec((1, Cin, S1), lambda i: (i, 0, 0)),
            pl.BlockSpec((1, Cskip, S2), lambda i: (i, 0, 0)),
            pl.BlockSpec((S1, S2), lambda i: (0, 0)),
            pl.BlockSpec((Cout1, kh1 * kw1 * Cin + 1), lambda i: (0, 0)),
            pl.BlockSpec((Cout2, kh2 * kw2 * Ccat + 1), lambda i: (0, 0)),
        ],
        out_specs=pl.BlockSpec((1, Cout2, S2), lambda i: (i, 0, 0)),
        scratch_shapes=[
            pltpu.VMEM((Cin, S2 + W2 + 1), jnp.float32),
            pltpu.VMEM((Ccat, S2 + 2 * (W2 + 1)), jnp.float32),
        ],
        compiler_params=pltpu.CompilerParams(
            dimension_semantics=("parallel",)),
        cost_estimate=pl.CostEstimate(flops=flops, transcendentals=0,
                                      bytes_accessed=bytes_accessed),
    )(x_flat, skip_flat, mup, w1aug, w2aug)

    return out.reshape(B, Cout2, H2, W2)                 # back to NCHW


def _reference_forward(x_nchw, skip_nchw, w1, b1, w2, b2):
    """Plain-JAX f32 reference (lax.conv) for correctness check."""
    x = jnp.transpose(x_nchw, (0, 2, 3, 1))
    skip = jnp.transpose(skip_nchw, (0, 2, 3, 1))
    x_up = jnp.repeat(jnp.repeat(x, 2, axis=1), 2, axis=2)
    x_pad = jnp.pad(x_up, ((0, 0), (0, 1), (0, 1), (0, 0)))
    dn = lax.conv_dimension_numbers(x_pad.shape, w1.shape,
                                    ("NHWC", "HWIO", "NHWC"))
    y1 = lax.conv_general_dilated(x_pad, w1, (1, 1), "VALID",
                                  dimension_numbers=dn) + b1[None, None, None, :]
    y1 = jnp.maximum(y1, 0.0)
    cat = jnp.concatenate([y1, skip], axis=-1)
    dn2 = lax.conv_dimension_numbers(cat.shape, w2.shape,
                                     ("NHWC", "HWIO", "NHWC"))
    y2 = lax.conv_general_dilated(cat, w2, (1, 1), "SAME",
                                  dimension_numbers=dn2) + b2[None, None, None, :]
    y2 = jnp.maximum(y2, 0.0)
    return jnp.transpose(y2, (0, 3, 1, 2))


if __name__ == "__main__":
    # Module config: in_channels=8 -> skip_channels=out_channels=4,
    # activ='relu', norm='none' (the DecBlock / Conv2d defaults).
    B, Cin, H, W = 2, 8, 8, 8
    Cskip = Cin // 2
    Cout = Cin // 2

    key = jax.random.PRNGKey(0)
    k_x, k_s, k_w1, k_b1, k_w2, k_b2 = jax.random.split(key, 6)

    x = jax.random.normal(k_x, (B, Cin, H, W), jnp.float32)            # NCHW
    skip = jax.random.normal(k_s, (B, Cskip, 2 * H, 2 * W), jnp.float32)

    # conv1: Conv2d(in=Cin, out=Cout, k=2) -> HWIO weights
    w1 = jax.random.normal(k_w1, (2, 2, Cin, Cout), jnp.float32) * 0.1
    b1 = jax.random.normal(k_b1, (Cout,), jnp.float32) * 0.1
    # conv2: Conv2d(in=Cout+Cskip, out=Cout, k=3, pad=1) -> HWIO weights
    w2 = jax.random.normal(k_w2, (3, 3, Cout + Cskip, Cout), jnp.float32) * 0.1
    b2 = jax.random.normal(k_b2, (Cout,), jnp.float32) * 0.1

    dec_fwd = jax.jit(dec_block_forward)
    out = jax.block_until_ready(dec_fwd(x, skip, w1, b1, w2, b2))

    ref = jax.block_until_ready(_reference_forward(x, skip, w1, b1, w2, b2))
    assert out.shape == (B, Cout, 2 * H, 2 * W), out.shape
    # Kernel uses bf16 MXU inputs with f32 accumulation; compare against the
    # pure-f32 reference with a correspondingly relaxed tolerance.
    np.testing.assert_allclose(np.asarray(out), np.asarray(ref),
                               rtol=3e-2, atol=3e-2)
    print("KERNEL_OK")
</pallas_src>

<mosaic_0001>
module attributes {stable_mosaic.version = 11 : i64} {
  func.func @_dec_block_kernel(%arg0: i32, %arg1: memref<1x8x64xf32, #tpu.memory_space<vmem>>, %arg2: memref<1x4x256xf32, #tpu.memory_space<vmem>>, %arg3: memref<64x256xbf16, #tpu.memory_space<vmem>>, %arg4: memref<4x33xbf16, #tpu.memory_space<vmem>>, %arg5: memref<4x73xbf16, #tpu.memory_space<vmem>>, %arg6: memref<1x4x256xf32, #tpu.memory_space<vmem>>, %arg7: memref<8x273xf32, #tpu.memory_space<vmem>>, %arg8: memref<8x290xf32, #tpu.memory_space<vmem>>) attributes {dimension_semantics = [#tpu.dimension_semantics<parallel>], iteration_bounds = array<i64: 2>, scalar_prefetch = 0 : i64, scratch_operands = 2 : i64, tpu.core_type = #tpu.core_type<tc>, window_params = [{transform_indices = @transform_0, window_bounds = array<i64: 1, 8, 64>}, {transform_indices = @transform_1, window_bounds = array<i64: 1, 4, 256>}, {pipeline_mode = #tpu.pipeline_mode<synchronous>, transform_indices = @transform_2, window_bounds = array<i64: 64, 256>}, {pipeline_mode = #tpu.pipeline_mode<synchronous>, transform_indices = @transform_3, window_bounds = array<i64: 4, 33>}, {pipeline_mode = #tpu.pipeline_mode<synchronous>, transform_indices = @transform_4, window_bounds = array<i64: 4, 73>}, {transform_indices = @transform_5, window_bounds = array<i64: 1, 4, 256>}]} {
    %0 = tpu.iota {dimensions = array<i32: 1>} : vector<1x256xi32>
    %c16_i32 = arith.constant 16 : i32
    %c0_i32 = arith.constant 0 : i32
    %1 = arith.cmpi eq, %c16_i32, %c0_i32 : i32
    %c1_i32 = arith.constant 1 : i32
    %2 = arith.select %1, %c1_i32, %c16_i32 : i32
    %3 = vector.broadcast %2 : i32 to vector<1x256xi32>
    %4 = arith.remsi %0, %3 : vector<1x256xi32>
    %c0_i32_0 = arith.constant 0 : i32
    %5 = vector.broadcast %c0_i32_0 : i32 to vector<1x256xi32>
    %6 = arith.cmpi ne, %4, %5 : vector<1x256xi32>
    %c0_i32_1 = arith.constant 0 : i32
    %7 = vector.broadcast %c0_i32_1 : i32 to vector<1x256xi32>
    %8 = arith.cmpi slt, %4, %7 : vector<1x256xi32>
    %c0_i32_2 = arith.constant 0 : i32
    %9 = arith.cmpi slt, %2, %c0_i32_2 : i32
    %10 = vector.broadcast %9 : i1 to vector<1x256xi1>
    %11 = vector.broadcast %10 : vector<1x256xi1> to vector<1x256xi1>
    %12 = arith.xori %8, %11 : vector<1x256xi1>
    %13 = arith.andi %12, %6 : vector<1x256xi1>
    %14 = vector.broadcast %2 : i32 to vector<1x256xi32>
    %15 = arith.addi %4, %14 : vector<1x256xi32>
    %16 = arith.select %13, %15, %4 : vector<1x256xi1>, vector<1x256xi32>
    %c0_i32_3 = arith.constant 0 : i32
    %17 = vector.broadcast %c0_i32_3 : i32 to vector<1x256xi32>
    %18 = arith.cmpi sgt, %16, %17 : vector<1x256xi32>
    %c15_i32 = arith.constant 15 : i32
    %19 = vector.broadcast %c15_i32 : i32 to vector<1x256xi32>
    %20 = arith.cmpi slt, %16, %19 : vector<1x256xi32>
    %cst = arith.constant 1.000000e+00 : f32
    %21 = vector.broadcast %cst : f32 to vector<1x256xf32>
    %c0 = arith.constant 0 : index
    %c0_4 = arith.constant 0 : index
    %c0_5 = arith.constant 0 : index
    %22 = vector.load %arg1[%c0, %c0_4, %c0_5] : memref<1x8x64xf32, #tpu.memory_space<vmem>>, vector<1x8x64xf32>
    %23 = vector.shape_cast %22 : vector<1x8x64xf32> to vector<8x64xf32>
    %24 = arith.truncf %23 : vector<8x64xf32> to vector<8x64xbf16>
    %c0_6 = arith.constant 0 : index
    %c0_7 = arith.constant 0 : index
    %25 = vector.load %arg3[%c0_6, %c0_7] : memref<64x256xbf16, #tpu.memory_space<vmem>>, vector<64x256xbf16>
    %cst_8 = arith.constant dense<0.000000e+00> : vector<8x256xf32>
    %26 = tpu.matmul %24, %25, %cst_8 {dimension_numbers = #tpu.dot_dimension_numbers<[1], [0], [0], [1], [0, 0, 1, 1], [], []>} : vector<8x64xbf16>, vector<64x256xbf16>, vector<8x256xf32> -> vector<8x256xf32>
    %cst_9 = arith.constant 0.000000e+00 : f32
    %27 = vector.broadcast %cst_9 : f32 to vector<8x273xf32>
    %c0_10 = arith.constant 0 : index
    %c0_11 = arith.constant 0 : index
    %28 = vector.load %arg7[%c0_10, %c0_11] : memref<8x273xf32, #tpu.memory_space<vmem>>, vector<8x273xf32>
    tpu.vector_store %arg7[%c0_10, %c0_11], %27 {strides = array<i32>} : memref<8x273xf32, #tpu.memory_space<vmem>>, vector<8x273xf32>,
    %c0_12 = arith.constant 0 : index
    %c0_13 = arith.constant 0 : index
    %29 = vector.load %arg7[%c0_12, %c0_13] : memref<8x273xf32, #tpu.memory_space<vmem>>, vector<8x256xf32>
    tpu.vector_store %arg7[%c0_12, %c0_13], %26 {strides = array<i32>} : memref<8x273xf32, #tpu.memory_space<vmem>>, vector<8x256xf32>,
    %c0_14 = arith.constant 0 : index
    %c0_15 = arith.constant 0 : index
    %30 = vector.load %arg7[%c0_14, %c0_15] : memref<8x273xf32, #tpu.memory_space<vmem>>, vector<8x256xf32>
    %c0_16 = arith.constant 0 : index
    %c1 = arith.constant 1 : index
    %31 = vector.load %arg7[%c0_16, %c1] : memref<8x273xf32, #tpu.memory_space<vmem>>, vector<8x256xf32>
    %cst_17 = arith.constant 0.000000e+00 : f32
    %32 = vector.shape_cast %20 : vector<1x256xi1> to vector<1x256xi1>
    %33 = vector.broadcast %32 : vector<1x256xi1> to vector<8x256xi1>
    %34 = vector.broadcast %cst_17 : f32 to vector<8x256xf32>
    %35 = arith.select %33, %31, %34 : vector<8x256xi1>, vector<8x256xf32>
    %c0_18 = arith.constant 0 : index
    %c16 = arith.constant 16 : index
    %36 = vector.load %arg7[%c0_18, %c16] : memref<8x273xf32, #tpu.memory_space<vmem>>, vector<8x256xf32>
    %c0_19 = arith.constant 0 : index
    %c17 = arith.constant 17 : index
    %37 = vector.load %arg7[%c0_19, %c17] : memref<8x273xf32, #tpu.memory_space<vmem>>, vector<8x256xf32>
    %cst_20 = arith.constant 0.000000e+00 : f32
    %38 = vector.shape_cast %20 : vector<1x256xi1> to vector<1x256xi1>
    %39 = vector.broadcast %38 : vector<1x256xi1> to vector<8x256xi1>
    %40 = vector.broadcast %cst_20 : f32 to vector<8x256xf32>
    %41 = arith.select %39, %37, %40 : vector<8x256xi1>, vector<8x256xf32>
    %42 = tpu.concatenate %30, %35, %36, %41, %21 in 0 : vector<8x256xf32>, vector<8x256xf32>, vector<8x256xf32>, vector<8x256xf32>, vector<1x256xf32> -> vector<33x256xf32>
    %c0_21 = arith.constant 0 : index
    %c0_22 = arith.constant 0 : index
    %43 = vector.load %arg4[%c0_21, %c0_22] : memref<4x33xbf16, #tpu.memory_space<vmem>>, vector<4x33xbf16>
    %44 = arith.truncf %42 : vector<33x256xf32> to vector<33x256xbf16>
    %cst_23 = arith.constant dense<0.000000e+00> : vector<4x256xf32>
    %45 = tpu.matmul %43, %44, %cst_23 {dimension_numbers = #tpu.dot_dimension_numbers<[1], [0], [0], [1], [0, 0, 1, 1], [], []>} : vector<4x33xbf16>, vector<33x256xbf16>, vector<4x256xf32> -> vector<4x256xf32>
    %cst_24 = arith.constant 0.000000e+00 : f32
    %46 = vector.broadcast %cst_24 : f32 to vector<4x256xf32>
    %47 = arith.maximumf %45, %46 : vector<4x256xf32>
    %cst_25 = arith.constant 0.000000e+00 : f32
    %48 = vector.broadcast %cst_25 : f32 to vector<8x290xf32>
    %c0_26 = arith.constant 0 : index
    %c0_27 = arith.constant 0 : index
    %49 = vector.load %arg8[%c0_26, %c0_27] : memref<8x290xf32, #tpu.memory_space<vmem>>, vector<8x290xf32>
    tpu.vector_store %arg8[%c0_26, %c0_27], %48 {strides = array<i32>} : memref<8x290xf32, #tpu.memory_space<vmem>>, vector<8x290xf32>,
    %c0_28 = arith.constant 0 : index
    %c17_29 = arith.constant 17 : index
    %50 = vector.load %arg8[%c0_28, %c17_29] : memref<8x290xf32, #tpu.memory_space<vmem>>, vector<4x256xf32>
    tpu.vector_store %arg8[%c0_28, %c17_29], %47 {strides = array<i32>} : memref<8x290xf32, #tpu.memory_space<vmem>>, vector<4x256xf32>,
    %c0_30 = arith.constant 0 : index
    %c0_31 = arith.constant 0 : index
    %c0_32 = arith.constant 0 : index
    %51 = vector.load %arg2[%c0_30, %c0_31, %c0_32] : memref<1x4x256xf32, #tpu.memory_space<vmem>>, vector<1x4x256xf32>
    %52 = vector.shape_cast %51 : vector<1x4x256xf32> to vector<4x256xf32>
    %c4 = arith.constant 4 : index
    %c17_33 = arith.constant 17 : index
    %53 = vector.load %arg8[%c4, %c17_33] : memref<8x290xf32, #tpu.memory_space<vmem>>, vector<4x256xf32>
    tpu.vector_store %arg8[%c4, %c17_33], %52 {strides = array<i32>} : memref<8x290xf32, #tpu.memory_space<vmem>>, vector<4x256xf32>,
    %c0_34 = arith.constant 0 : index
    %c0_35 = arith.constant 0 : index
    %54 = vector.load %arg8[%c0_34, %c0_35] : memref<8x290xf32, #tpu.memory_space<vmem>>, vector<8x256xf32>
    %cst_36 = arith.constant 0.000000e+00 : f32
    %55 = vector.shape_cast %18 : vector<1x256xi1> to vector<1x256xi1>
    %56 = vector.broadcast %55 : vector<1x256xi1> to vector<8x256xi1>
    %57 = vector.broadcast %cst_36 : f32 to vector<8x256xf32>
    %58 = arith.select %56, %54, %57 : vector<8x256xi1>, vector<8x256xf32>
    %c0_37 = arith.constant 0 : index
    %c1_38 = arith.constant 1 : index
    %59 = vector.load %arg8[%c0_37, %c1_38] : memref<8x290xf32, #tpu.memory_space<vmem>>, vector<8x256xf32>
    %c0_39 = arith.constant 0 : index
    %c2 = arith.constant 2 : index
    %60 = vector.load %arg8[%c0_39, %c2] : memref<8x290xf32, #tpu.memory_space<vmem>>, vector<8x256xf32>
    %cst_40 = arith.constant 0.000000e+00 : f32
    %61 = vector.shape_cast %20 : vector<1x256xi1> to vector<1x256xi1>
    %62 = vector.broadcast %61 : vector<1x256xi1> to vector<8x256xi1>
    %63 = vector.broadcast %cst_40 : f32 to vector<8x256xf32>
    %64 = arith.select %62, %60, %63 : vector<8x256xi1>, vector<8x256xf32>
    %c0_41 = arith.constant 0 : index
    %c16_42 = arith.constant 16 : index
    %65 = vector.load %arg8[%c0_41, %c16_42] : memref<8x290xf32, #tpu.memory_space<vmem>>, vector<8x256xf32>
    %cst_43 = arith.constant 0.000000e+00 : f32
    %66 = vector.shape_cast %18 : vector<1x256xi1> to vector<1x256xi1>
    %67 = vector.broadcast %66 : vector<1x256xi1> to vector<8x256xi1>
    %68 = vector.broadcast %cst_43 : f32 to vector<8x256xf32>
    %69 = arith.select %67, %65, %68 : vector<8x256xi1>, vector<8x256xf32>
    %c0_44 = arith.constant 0 : index
    %c17_45 = arith.constant 17 : index
    %70 = vector.load %arg8[%c0_44, %c17_45] : memref<8x290xf32, #tpu.memory_space<vmem>>, vector<8x256xf32>
    %c0_46 = arith.constant 0 : index
    %c18 = arith.constant 18 : index
    %71 = vector.load %arg8[%c0_46, %c18] : memref<8x290xf32, #tpu.memory_space<vmem>>, vector<8x256xf32>
    %cst_47 = arith.constant 0.000000e+00 : f32
    %72 = vector.shape_cast %20 : vector<1x256xi1> to vector<1x256xi1>
    %73 = vector.broadcast %72 : vector<1x256xi1> to vector<8x256xi1>
    %74 = vector.broadcast %cst_47 : f32 to vector<8x256xf32>
    %75 = arith.select %73, %71, %74 : vector<8x256xi1>, vector<8x256xf32>
    %c0_48 = arith.constant 0 : index
    %c32 = arith.constant 32 : index
    %76 = vector.load %arg8[%c0_48, %c32] : memref<8x290xf32, #tpu.memory_space<vmem>>, vector<8x256xf32>
    %cst_49 = arith.constant 0.000000e+00 : f32
    %77 = vector.shape_cast %18 : vector<1x256xi1> to vector<1x256xi1>
    %78 = vector.broadcast %77 : vector<1x256xi1> to vector<8x256xi1>
    %79 = vector.broadcast %cst_49 : f32 to vector<8x256xf32>
    %80 = arith.select %78, %76, %79 : vector<8x256xi1>, vector<8x256xf32>
    %c0_50 = arith.constant 0 : index
    %c33 = arith.constant 33 : index
    %81 = vector.load %arg8[%c0_50, %c33] : memref<8x290xf32, #tpu.memory_space<vmem>>, vector<8x256xf32>
    %c0_51 = arith.constant 0 : index
    %c34 = arith.constant 34 : index
    %82 = vector.load %arg8[%c0_51, %c34] : memref<8x290xf32, #tpu.memory_space<vmem>>, vector<8x256xf32>
    %cst_52 = arith.constant 0.000000e+00 : f32
    %83 = vector.shape_cast %20 : vector<1x256xi1> to vector<1x256xi1>
    %84 = vector.broadcast %83 : vector<1x256xi1> to vector<8x256xi1>
    %85 = vector.broadcast %cst_52 : f32 to vector<8x256xf32>
    %86 = arith.select %84, %82, %85 : vector<8x256xi1>, vector<8x256xf32>
    %87 = tpu.concatenate %58, %59, %64, %69, %70, %75, %80, %81, %86, %21 in 0 : vector<8x256xf32>, vector<8x256xf32>, vector<8x256xf32>, vector<8x256xf32>, vector<8x256xf32>, vector<8x256xf32>, vector<8x256xf32>, vector<8x256xf32>, vector<8x256xf32>, vector<1x256xf32> -> vector<73x256xf32>
    %c0_53 = arith.constant 0 : index
    %c0_54 = arith.constant 0 : index
    %88 = vector.load %arg5[%c0_53, %c0_54] : memref<4x73xbf16, #tpu.memory_space<vmem>>, vector<4x73xbf16>
    %89 = arith.truncf %87 : vector<73x256xf32> to vector<73x256xbf16>
    %cst_55 = arith.constant dense<0.000000e+00> : vector<4x256xf32>
    %90 = tpu.matmul %88, %89, %cst_55 {dimension_numbers = #tpu.dot_dimension_numbers<[1], [0], [0], [1], [0, 0, 1, 1], [], []>} : vector<4x73xbf16>, vector<73x256xbf16>, vector<4x256xf32> -> vector<4x256xf32>
    %cst_56 = arith.constant 0.000000e+00 : f32
    %91 = vector.broadcast %cst_56 : f32 to vector<4x256xf32>
    %92 = arith.maximumf %90, %91 : vector<4x256xf32>
    %93 = vector.shape_cast %92 : vector<4x256xf32> to vector<1x4x256xf32>
    %c0_57 = arith.constant 0 : index
    %c0_58 = arith.constant 0 : index
    %c0_59 = arith.constant 0 : index
    %94 = vector.load %arg6[%c0_57, %c0_58, %c0_59] : memref<1x4x256xf32, #tpu.memory_space<vmem>>, vector<1x4x256xf32>
    tpu.vector_store %arg6[%c0_57, %c0_58, %c0_59], %93 {strides = array<i32>} : memref<1x4x256xf32, #tpu.memory_space<vmem>>, vector<1x4x256xf32>,
    return
  }
  func.func @transform_0(%arg0: i32) -> (i32, i32, i32) {
    %c0_i32 = arith.constant 0 : i32
    %c0_i32_0 = arith.constant 0 : i32
    %c0_i32_1 = arith.constant 0 : i32
    return %arg0, %c0_i32, %c0_i32_0 : i32, i32, i32
  }
  func.func @transform_1(%arg0: i32) -> (i32, i32, i32) {
    %c0_i32 = arith.constant 0 : i32
    %c0_i32_0 = arith.constant 0 : i32
    %c0_i32_1 = arith.constant 0 : i32
    return %arg0, %c0_i32, %c0_i32_0 : i32, i32, i32
  }
  func.func @transform_2(%arg0: i32) -> (i32, i32) {
    %c0_i32 = arith.constant 0 : i32
    %c0_i32_0 = arith.constant 0 : i32
    %c0_i32_1 = arith.constant 0 : i32
    return %c0_i32, %c0_i32_0 : i32, i32
  }
  func.func @transform_3(%arg0: i32) -> (i32, i32) {
    %c0_i32 = arith.constant 0 : i32
    %c0_i32_0 = arith.constant 0 : i32
    %c0_i32_1 = arith.constant 0 : i32
    return %c0_i32, %c0_i32_0 : i32, i32
  }
  func.func @transform_4(%arg0: i32) -> (i32, i32) {
    %c0_i32 = arith.constant 0 : i32
    %c0_i32_0 = arith.constant 0 : i32
    %c0_i32_1 = arith.constant 0 : i32
    return %c0_i32, %c0_i32_0 : i32, i32
  }
  func.func @transform_5(%arg0: i32) -> (i32, i32, i32) {
    %c0_i32 = arith.constant 0 : i32
    %c0_i32_0 = arith.constant 0 : i32
    %c0_i32_1 = arith.constant 0 : i32
    return %arg0, %c0_i32, %c0_i32_0 : i32, i32, i32
  }
}

</mosaic_0001>

<bundles_post_ra>
// kernel: dec_block_forward.1
= control target key start
LH: loop header
LB: loop body
LE: loop exit
PB: predicated region body
PF: predicated region fallthrough
CT: control target
= control target key end

     0   :  { %s966_s18 = smov 0   ;;  %s1158_s0 = inlined_call_operand.vmem [shape: f32[2,8,64], index: 0, kind: input, shape index: {}]   ;;  %s1159_s1 = inlined_call_operand.vmem [shape: f32[2,4,256], index: 1, kind: input, shape index: {}]   ;;  %s1160_s2 = inlined_call_operand.vmem [shape: bf16[64,256], index: 2, kind: input, shape index: {}]   ;;  %s1161_s3 = inlined_call_operand.vmem [shape: bf16[4,33], index: 3, kind: input, shape index: {}]   ;;  %s1162_s4 = inlined_call_operand.vmem [shape: bf16[4,73], index: 4, kind: input, shape index: {}]   ;;  %s1163_s5 = inlined_call_operand.vmem [shape: f32[2,4,256], index: 5, kind: output, shape index: {}]  }
   0x1 LB: > { %s763_s19 = sadd.s32 4294967295, %s920_s18   ;;  %p767_p0 = scmp.ge.s32.totalorder %s920_s18, 1  ;;  %s920_s18 = sphi %s966_s18, %s15_s18  }
   0x2   : > { %p196_p1 = scmp.lt.s32.totalorder %s920_s18, 3 }
   0x4   : > { %p197_p2 = pnand %p767_p0, %p196_p1 }
   0x5   : > { %v901_v0 = vld [vmem:[%s1160_s2 + $0x4] ss:$8 sps:$4 sm:$0xff] (!%p197_p2)   ;;  %p228_p3 = scmp.lt.s32.totalorder (!%p197_p2), %s763_s19, 1  ;;  %v903_v1 = vld [vmem:[%s1160_s2] ss:$8 sps:$4 sm:$0xff] (!%p197_p2)   ;;  %v922_v2 = vmov (!%p197_p2), 0   ;;  %v243_v18 = vlaneseq (!%p197_p2) }
   0x6   : > { %200 = sbr.rel (%p197_p2) target bundleno = 1083 (0x43b), region = 40  ;;  %360 = vmatprep.mubr.bf16.mxu0 (!%p197_p2), %v922_v2  ;;  %680 = vmatprep.mubr.bf16.mxu1 (!%p197_p2), %v922_v2  ;;  %v904_v3 = vld [vmem:[%s1160_s2 + $0x14] ss:$8 sps:$4 sm:$0xff] (!%p197_p2)   ;;  %v906_v4 = vld [vmem:[%s1160_s2 + $0x10] ss:$8 sps:$4 sm:$0xff] (!%p197_p2)   ;;  %vm324_vm0 = vcmask (!%p197_p2), 523264  }
   0x7   : > { %328 = vmatprep.subr.bf16.mxu0 (!%p197_p2), %v901_v0  ;;  %v907_v5 = vld [vmem:[%s1160_s2 + $0x24] ss:$8 sps:$4 sm:$0xff] (!%p197_p2)   ;;  %v909_v6 = vld [vmem:[%s1160_s2 + $0x20] ss:$8 sps:$4 sm:$0xff] (!%p197_p2)   ;;  %v910_v7 = vld [vmem:[%s1160_s2 + $0x34] ss:$8 sps:$4 sm:$0xff] (!%p197_p2)  }
   0x8   : > { %329 = vmatpush1.bf16.msra.mxu0 (!%p197_p2), %v903_v1  ;;  %v912_v8 = vld [vmem:[%s1160_s2 + $0x30] ss:$8 sps:$4 sm:$0xff] (!%p197_p2)   ;;  %vm371_vm1 = vcmask (!%p197_p2), 138240   ;;  %v923_v11 = vmov (!%p197_p2), 0.0   ;;  %s924_s15 = smov (!%p197_p2), 111   ;;  %s925_s16 = smov (!%p197_p2), 127  }
   0x9   : > { %330 = vmatprep.subr.bf16.mxu0 (!%p197_p2), %v904_v3  ;;  %372 = vst.msk [vmem:[#allocation2 + $0x10] sm:$0xff] (!%p197_p2), %vm371_vm1, %v923_v11  ;;  %481 = vst [vmem:[#allocation3] sm:$0xff] (!%p197_p2), %v923_v11  ;;  %s926_s17 = smov (!%p197_p2), 112   ;;  %v1017_v19 = vand.u32 (!%p197_p2), 127, %v243_v18  ;;  %vm391_vm2 = vcmask (!%p197_p2), 1039360   ;;  %vm927_vm5 = vmmov (!%p197_p2), 1  }
   0xa   : > { %482 = vst [vmem:[#allocation3 + $0x8] sm:$0xff] (!%p197_p2), %v923_v11  ;;  %vm432_vm7 = vcmask (!%p197_p2), 1040384   ;;  %vm417_vm8 = vcmask (!%p197_p2), 916480   ;;  %vm404_vm9 = vcmask (!%p197_p2), 908288   ;;  %v422_v51 = vld [vmem:[%s1161_s3] sm:$0x3] (!%p197_p2) }
   0xb   : > { %v1020_v20 = vadd.s32 (!%p197_p2), 128, %v1017_v19  ;;  %v250_v22 = vand.u32 (!%p197_p2), 15, %v1017_v19  ;;  %v434_v41 = vsel (!%p197_p2), %vm432_vm7, 65535, %v922_v2  ;;  %vm428_vm11 = vcmask (!%p197_p2), 269312   ;;  %s928_s24 = smov (!%p197_p2), 17   ;;  %s929_s25 = smov (!%p197_p2), 126  }
   0xc   : > { %331 = vmatpush1.bf16.msra.mxu0 (!%p197_p2), %v906_v4  ;;  %v436_v49 = vand.u32 (!%p197_p2), 1.0|1.0, %v434_v41  ;;  %vm483_vm12 = vcmask (!%p197_p2), 277504   ;;  %vm495_vm13 = vcmask (!%p197_p2), 1043592   ;;  %vm498_vm14 = vcmask (!%p197_p2), 134144   ;;  %s930_s26 = smov (!%p197_p2), 110  }
   0xd   : > { %s1181_s19 = smov (!%p228_p3, %s763_s19), 1  ;;  %332 = vmatprep.subr.bf16.mxu0 %v907_v5  ;;  %v257_v21 = vand.u32 15, %v1020_v20  ;;  %vm1032_vm4 = vcmp.lt.s32.totalorder %v250_v22, 15  ;;  %484 = vst.msk [vmem:[#allocation3 + $0x10] sm:$0xff] %vm483_vm12, %v923_v11  ;;  %vm511_vm15 = vcmask 1047692   ;;  %s931_s27 = smov 96  }
   0xe   : > { %s991_s30 = sshll.u32 %s1181_s19, 3  ;;  %vm1048_vm10 = vmpackc.low %vm1032_vm4, %vm927_vm5  ;;  %s932_s28 = smov 95   ;;  %vm1091_vm7 = vcmp.gt.s32.totalorder %v250_v22, 0  ;;  %vm534_vm12 = vcmask 1031168  }
   0xf   : > { %s231_s12 = scalar_lea.vmem %s1158_s0, %s991_s30  ;;  %vm1026_vm3 = vcmp.lt.s32.totalorder %v257_v21, 15  ;;  %s236_s23 = scalar_lea.vmem %s1159_s1, %s991_s30 }
  0x10   : > { %333 = vmatpush1.bf16.msra.mxu0 %v909_v6  ;;  %v274_v9 = vld [vmem:[%s231_s12] sm:$0xff]  ;;  %v377_v12 = vld [vmem:[#allocation2 + $0x10] sm:$0xff]  ;;  %vm1040_vm6 = vmpackc.low %vm1026_vm3, %vm927_vm5  ;;  %s933_s29 = smov 94   ;;  %s241_s10 = scalar_lea.vmem %s1163_s5, %s991_s30 }
  0x11   : > { %334 = vmatprep.subr.bf16.mxu0 %v910_v7  ;;  %v275_v10 = vpack.c.bf16 %v274_v9, %v274_v9  ;;  %v500_v53 = vld [vmem:[%s236_s23] sm:$0xff] }
  0x12   : > { %v502_v59 = vcombine.low %v500_v53, %v500_v53 }
  0x14   : > { %335 = vmatpush1.bf16.msra.mxu0 %v912_v8 }
  0x17   : > { %781 = vmatmul.mubr.msk.bf16.vlgmr.msra.gmra.mrb[0].mxu0 %vm324_vm0, %v275_v10  ;;  %vm514_vm0 = vcmask 138244  }
  0x18   : > { %470 = vmatprep.mubr.bf16.mxu0 %v922_v2 }
  0xea   : > { %v362_v13 = vpop.f32.mrb[0].mxu0 }
  0xeb   : > { %v364_v14 = vpop.f32.mrb[1].mxu0 }
  0xec   : > { %v366_v15 = vpop.f32.mrb[2].mxu0  ;;  %v851_v16 = vpack.i.bf16 %v377_v12, %v364_v14 }
  0xed   : > { %v367_v17 = vpop.f32.mrb[3].mxu0 }
  0xee   : > { %852 = vrot.lane.b32.xlu1 %v851_v16, %s924_s15  ;;  %847 = vrot.lane.b32.xlu0 %v851_v16, %s925_s16 }
  0xf2   : > { %857 = vrot.lane.b32.xlu1 %v851_v16, %s926_s17  ;;  %385 = vrot.lane.b32.xlu0 %v362_v13, %s925_s16 }
  0xf6   : > { %411 = vrot.lane.b32.xlu1 %v362_v13, %s926_s17  ;;  %398 = vrot.lane.b32.xlu0 %v362_v13, %s924_s15 }
 0x160   : > { %v853_v23 = vpop.permute.xlu1 %852  ;;  %v848_v24 = vpop.permute.xlu0 %847 }
 0x161   : > { %v850_v26 = vunpack.i.h.bf16 %v848_v24  ;;  %v849_v27 = vunpack.i.l.bf16 %v848_v24  ;;  %v855_v29 = vunpack.i.h.bf16 %v853_v23  ;;  %v854_v30 = vunpack.i.l.bf16 %v853_v23 }
 0x163   : > { %v393_v31 = vsel %vm391_vm2, %v849_v27, %v850_v26  ;;  %v406_v42 = vsel %vm404_vm9, %v854_v30, %v855_v29 }
 0x164   : > { %v858_v33 = vpop.permute.xlu1 %857  ;;  %v386_v34 = vpop.permute.xlu0 %385  ;;  %v783_v35 = vpack.c.bf16 %v393_v31, %v364_v14 }
 0x165   : > { %v860_v36 = vunpack.i.h.bf16 %v858_v33  ;;  %v859_v37 = vunpack.i.l.bf16 %v858_v33  ;;  %v392_v38 = vsel %vm391_vm2, %v386_v34, %v849_v27 }
 0x166   : > { %v786_v40 = vpack.c.bf16 %v392_v38, %v362_v13  ;;  %784 = vmatprep.subr.msk.bf16.mxu0 %vm1040_vm6, %v783_v35 }
 0x167   : > { %v419_v43 = vsel %vm417_vm8, %v859_v37, %v860_v36 }
 0x168   : > { %v412_v44 = vpop.permute.xlu1 %411  ;;  %v399_v45 = vpop.permute.xlu0 %398  ;;  %787 = vmatpush1.bf16.msk.msra.mxu0 %vm1048_vm10, %v786_v40  ;;  %v789_v46 = vpack.c.bf16 %v406_v42, %v419_v43 }
 0x169   : > { %v418_v47 = vsel %vm417_vm8, %v412_v44, %v859_v37  ;;  %v405_v48 = vsel %vm404_vm9, %v399_v45, %v854_v30 }
 0x16a   : > { %v792_v50 = vpack.c.bf16 %v405_v48, %v418_v47  ;;  %790 = vmatprep.subr.msk.bf16.mxu0 %vm1040_vm6, %v789_v46 }
 0x16c   : > { %793 = vmatpush1.bf16.msk.msra.mxu0 %vm1048_vm10, %v792_v50 }
 0x16d   : > { %442 = vmatprep.subr.bf16.mxu0 %v436_v49 }
 0x170   : > { %443 = vmatpush1.bf16.msra.mxu0 %v436_v49 }
 0x173   : > { %794 = vmatmul.mubr.msk.bf16.vlgmr.msra.gmra.mrb[4].mxu0 %vm428_vm11, %v422_v51 }
 0x246   : > { %v472_v52 = vpop.f32.mrb[4].mxu0 }
 0x247   : > { %v479_v54 = vmax.f32 %v472_v52, 0.0  ;;  %v474_v55 = vpop.f32.mrb[5].mxu0 }
 0x248   : > { %v480_v56 = vmax.f32 %v474_v55, 0.0  ;;  %v476_v57 = vpop.f32.mrb[6].mxu0 }
 0x249   : > { %487 = vrot.lane.b32.xlu0 %v479_v54, %s928_s24  ;;  %v477_v58 = vpop.f32.mrb[7].mxu0 }
 0x24a   : > { %489 = vrot.lane.b32.xlu1 %v480_v56, %s928_s24  ;;  %v934_v56 = vmov 65535  }
 0x24d   : > { %503 = vrot.lane.b32.xlu0 %v502_v59, %s928_s24 }
 0x24e   : > { %505 = vrot.lane.b32.xlu1 %v500_v53, %s928_s24 }
 0x2bb   : > { %v488_v60 = vpop.permute.xlu0 %487 }
 0x2bc   : > { %496 = vst.msk [vmem:[#allocation3] sm:$0xf] %vm495_vm13, %v488_v60  ;;  %v490_v61 = vpop.permute.xlu1 %489  ;;  %vm1107_vm13 = vmpackc.low %vm927_vm5, %vm1091_vm7 }
 0x2bd   : > { %v491_v62 = vsel %vm371_vm1, %v488_v60, %v490_v61  ;;  %499 = vst.msk [vmem:[#allocation3 + $0x10] sm:$0xf] %vm498_vm14, %v490_v61  ;;  %vm618_vm14 = vcmask 777216  }
 0x2be   : > { %497 = vst [vmem:[#allocation3 + $0x8] sm:$0xf] %v491_v62 }
 0x2bf   : > { %v504_v63 = vpop.permute.xlu0 %503 }
 0x2c0   : > { %512 = vst.msk [vmem:[#allocation3] sm:$0xf0] %vm511_vm15, %v504_v63  ;;  %v506_v0 = vpop.permute.xlu1 %505  ;;  %vm638_vm15 = vcmask 1043456  }
 0x2c1   : > { %v507_v1 = vsel %vm371_vm1, %v504_v63, %v506_v0  ;;  %515 = vst.msk [vmem:[#allocation3 + $0x10] sm:$0xf0] %vm514_vm0, %v506_v0  ;;  %vm1085_vm1 = vcmp.gt.s32.totalorder %v257_v21, 0  ;;  %vm572_vm0 = vcmask 785408   ;;  %v640_v57 = vsel %vm638_vm15, 4294967295, %v934_v56 }
 0x2c2   : > { %513 = vst [vmem:[#allocation3 + $0x8] sm:$0xf0] %v507_v1  ;;  %vm1099_vm11 = vmpackc.low %vm927_vm5, %vm1085_vm1  ;;  %vm559_vm5 = vcmask 900096  }
 0x2c7   : > { %v516_v2 = vld [vmem:[#allocation3] sm:$0xff] }
 0x2c8   : > { %528 = vrot.lane.b32.xlu0 %v516_v2, %s929_s25  ;;  %592 = vrot.lane.b32.xlu1 %v516_v2, %s925_s16  ;;  %v524_v4 = vld [vmem:[#allocation3 + $0x10] sm:$0xff] }
 0x2c9   : > { %v517_v3 = vld [vmem:[#allocation3 + $0x8] sm:$0xff] }
 0x2ca   : > { %v871_v5 = vpack.i.bf16 %v524_v4, %v517_v3 }
 0x2cc   : > { %553 = vrot.lane.b32.xlu0 %v516_v2, %s930_s26  ;;  %541 = vrot.lane.b32.xlu1 %v516_v2, %s926_s17 }
 0x2d0   : > { %566 = vrot.lane.b32.xlu0 %v516_v2, %s931_s27  ;;  %602 = vrot.lane.b32.xlu1 %v516_v2, %s924_s15 }
 0x2d4   : > { %872 = vrot.lane.b32.xlu1 %v871_v5, %s926_s17  ;;  %862 = vrot.lane.b32.xlu0 %v871_v5, %s925_s16 }
 0x2d8   : > { %882 = vrot.lane.b32.xlu1 %v871_v5, %s924_s15  ;;  %867 = vrot.lane.b32.xlu0 %v871_v5, %s929_s25 }
 0x2dc   : > { %892 = vrot.lane.b32.xlu1 %v871_v5, %s932_s28  ;;  %877 = vrot.lane.b32.xlu0 %v871_v5, %s930_s26 }
 0x2e0   : > { %897 = vrot.lane.b32.xlu1 %v871_v5, %s933_s29  ;;  %887 = vrot.lane.b32.xlu0 %v871_v5, %s931_s27 }
 0x2e4   : > { %579 = vrot.lane.b32.xlu1 %v516_v2, %s933_s29  ;;  %612 = vrot.lane.b32.xlu0 %v516_v2, %s932_s28 }
 0x33a   : > { %v529_v6 = vpop.permute.xlu0 %528  ;;  %v593_v7 = vpop.permute.xlu1 %592 }
 0x33e   : > { %v554_v8 = vpop.permute.xlu0 %553  ;;  %v542_v9 = vpop.permute.xlu1 %541 }
 0x342   : > { %v1081_v10 = vpop.permute.xlu0 %566  ;;  %v603_v11 = vpop.permute.xlu1 %602 }
 0x346   : > { %v863_v12 = vpop.permute.xlu0 %862  ;;  %v873_v13 = vpop.permute.xlu1 %872 }
 0x347   : > { %v865_v15 = vunpack.i.h.bf16 %v863_v12  ;;  %v864_v16 = vunpack.i.l.bf16 %v863_v12  ;;  %v875_v18 = vunpack.i.h.bf16 %v873_v13  ;;  %v874_v23 = vunpack.i.l.bf16 %v873_v13  ;;  %v623_v13 = vld [vmem:[%s1162_s4] sm:$0x3] }
 0x349   : > { %v599_v24 = vsel %vm391_vm2, %v864_v16, %v865_v15  ;;  %v598_v21 = vsel %vm391_vm2, %v593_v7, %v864_v16  ;;  %v547_v35 = vsel %vm417_vm8, %v542_v9, %v874_v23  ;;  %v548_v36 = vsel %vm417_vm8, %v874_v23, %v875_v18  ;;  %vm801_vm2 = vmpackc.low %vm1085_vm1, %vm1026_vm3 }
 0x34a   : > { %v868_v26 = vpop.permute.xlu0 %867  ;;  %v883_v19 = vpop.permute.xlu1 %882  ;;  %v796_v22 = vpack.c.bf16 %v599_v24, %v517_v3  ;;  %v799_v29 = vpack.c.bf16 %v598_v21, %v516_v2  ;;  %vm804_vm8 = vmpackc.low %vm1091_vm7, %vm1032_vm4  ;;  %vm585_vm1 = vcmask 769024   ;;  %vm639_vm7 = vcmask 1044480  }
 0x34b   : > { %v870_v30 = vunpack.i.h.bf16 %v868_v26  ;;  %v869_v31 = vunpack.i.l.bf16 %v868_v26  ;;  %v885_v33 = vunpack.i.h.bf16 %v883_v19  ;;  %v884_v34 = vunpack.i.l.bf16 %v883_v19 }
 0x34c   : > { %797 = vmatprep.subr.msk.bf16.mxu1 %vm1099_vm11, %v796_v22  ;;  %v641_v5 = vsel %vm639_vm7, %v640_v57, 0  ;;  %v935_v7 = vmov 1.0  }
 0x34d   : > { %v535_v37 = vsel %vm534_vm12, %v529_v6, %v869_v31  ;;  %v536_v38 = vsel %vm534_vm12, %v869_v31, %v870_v30  ;;  %800 = vmatpush1.bf16.msk.msra.mxu1 %vm1107_vm13, %v799_v29  ;;  %v608_v46 = vsel %vm404_vm9, %v603_v11, %v884_v34  ;;  %v609_v47 = vsel %vm404_vm9, %v884_v34, %v885_v33 }
 0x34e   : > { %v802_v40 = vpack.c.bf16 %v548_v36, %v536_v38  ;;  %v805_v41 = vpack.c.bf16 %v547_v35, %v535_v37  ;;  %v878_v42 = vpop.permute.xlu0 %877  ;;  %v893_v43 = vpop.permute.xlu1 %892 }
 0x34f   : > { %v880_v44 = vunpack.i.h.bf16 %v878_v42  ;;  %v879_v45 = vunpack.i.l.bf16 %v878_v42  ;;  %v895_v50 = vunpack.i.h.bf16 %v893_v43  ;;  %v894_v51 = vunpack.i.l.bf16 %v893_v43 }
 0x350   : > { %803 = vmatprep.subr.msk.bf16.mxu1 %vm801_vm2, %v802_v40 }
 0x351   : > { %v560_v48 = vsel %vm559_vm5, %v554_v8, %v879_v45  ;;  %v561_v49 = vsel %vm559_vm5, %v879_v45, %v880_v44  ;;  %806 = vmatpush1.bf16.msk.msra.mxu1 %vm804_vm8, %v805_v41  ;;  %v620_v63 = vsel %vm618_vm14, %v894_v51, %v895_v50 }
 0x352   : > { %v808_v52 = vpack.c.bf16 %v561_v49, %v609_v47  ;;  %v811_v53 = vpack.c.bf16 %v560_v48, %v608_v46  ;;  %v888_v54 = vpop.permute.xlu0 %887  ;;  %v898_v55 = vpop.permute.xlu1 %897 }
 0x353   : > { %v890_v58 = vunpack.i.h.bf16 %v888_v54  ;;  %v889_v59 = vunpack.i.l.bf16 %v888_v54  ;;  %v900_v60 = vunpack.i.h.bf16 %v898_v55  ;;  %v899_v61 = vunpack.i.l.bf16 %v898_v55 }
 0x354   : > { %809 = vmatprep.subr.msk.bf16.mxu1 %vm1040_vm6, %v808_v52 }
 0x355   : > { %812 = vmatpush1.bf16.msk.msra.mxu1 %vm1048_vm10, %v811_v53  ;;  %v574_v62 = vsel %vm572_vm0, %v889_v59, %v890_v58  ;;  %v587_v0 = vsel %vm585_vm1, %v899_v61, %v900_v60  ;;  %v573_v32 = vsel %vm572_vm0, %v1081_v10, %v889_v59 }
 0x356   : > { %v613_v1 = vpop.permute.xlu0 %612  ;;  %v814_v2 = vpack.c.bf16 %v620_v63, %v574_v62  ;;  %v580_v3 = vpop.permute.xlu1 %579  ;;  %v591_v4 = vsel %vm1026_vm3, %v587_v0, 0.0  ;;  %vm634_vm3 = vcmask 596992  }
 0x357   : > { %v619_v39 = vsel %vm618_vm14, %v613_v1, %v894_v51  ;;  %v586_v6 = vsel %vm585_vm1, %v580_v3, %v899_v61  ;;  %v633_v8 = vpack.c.bf16 %v935_v7, %v591_v4 }
 0x358   : > { %v817_v9 = vpack.c.bf16 %v619_v39, %v573_v32  ;;  %v590_v11 = vsel %vm1032_vm4, %v586_v6, 0.0  ;;  %815 = vmatprep.subr.msk.bf16.mxu1 %vm1099_vm11, %v814_v2 }
 0x359   : > { %v632_v25 = vpack.c.bf16 %v935_v7, %v590_v11  ;;  %v646_v12 = vand.u32 %v641_v5, %v633_v8 }
 0x35a   : > { %818 = vmatpush1.bf16.msk.msra.mxu1 %vm1107_vm13, %v817_v9 }
 0x35b   : > { %656 = vmatprep.subr.bf16.mxu1 %v646_v12  ;;  %v643_v10 = vand.u32 %v641_v5, %v632_v25 }
 0x35e   : > { %657 = vmatpush1.bf16.msra.mxu1 %v643_v10 }
 0x361   : > { %819 = vmatmul.mubr.msk.bf16.vlgmr.msra.gmra.mrb[0].mxu1 %vm634_vm3, %v623_v13 }
 0x434   : > { %v682_v28 = vpop.f32.mrb[0].mxu1 }
 0x435   : > { %v689_v14 = vmax.f32 %v682_v28, 0.0  ;;  %v684_v15 = vpop.f32.mrb[1].mxu1 }
 0x436   : > { %v690_v16 = vmax.f32 %v684_v15, 0.0  ;;  %v686_v17 = vpop.f32.mrb[2].mxu1 }
 0x437   : > { %v687_v18 = vpop.f32.mrb[3].mxu1 }
 0x438   : > { %v693_v23 = vcombine.low %v689_v14, %v690_v16 }
 0x43a   : > { %695 = vst [vmem:[%s241_s10] sm:$0xff] %v693_v23 }
 0x43b PF: > { %s15_s18 = sadd.s32 1, %s920_s18  }
 0x43c   : > { %p12_p4 = scmp.ge.s32.totalorder %s15_s18, 4  }
 0x43e   :  { %14 = sbr.rel (!%p12_p4) target bundleno = 1 (0x1), region = 73 }

</bundles_post_ra>
